<compile_context>
chip_gen: v7x
topology: tpu7x:2x2x1
jax: 0.10.0
libtpu: 0.0.40
codegen_flags: <defaults>
</compile_context>

<pallas_src>
import functools
import numpy as np
import jax
import jax.numpy as jnp
from jax.experimental import pallas as pl
from jax.experimental.pallas import tpu as pltpu

LOG2PI = float(np.log(2.0 * np.pi))
LOG_SCALE_FACTOR = 3.0
KSIZE = 3  # kernel_size=3, stride=1, padding=1 (SAME)


def _split_fwd_kernel(x_ref, w_ref, b_ref, ld_in_ref, *out_refs,
                      height, width, return_conv):
    """One batch tile.

    x_ref    : (bt, C, HW)       VMEM  NCHW input, spatial dims flattened (lane-dense)
    w_ref    : (cout, 9*cin)     VMEM  conv weight, tap-major/channel-minor,
                                       pre-multiplied by exp(logs * 3)
    b_ref    : (cout, 1)         VMEM  conv bias, pre-multiplied by exp(logs * 3)
    ld_in_ref: (bt, 1, 1)        VMEM  incoming log_det
    out_refs : ([conv_ref,] ld_out_ref)
      conv_ref  : (bt, cout, HW) VMEM  optional: scaled conv output (mean ++ log_sd)
      ld_out_ref: (bt, 1, 1)     VMEM  updated log_det
    """
    if return_conv:
        conv_ref, ld_out_ref = out_refs
    else:
        (ld_out_ref,) = out_refs

    bt, C, HW = x_ref.shape
    cout = w_ref.shape[0]
    chalf = C // 2
    cin = chalf
    f32 = jnp.float32

    # SAME-padding border masks, shape (1, HW); broadcast over channel rows.
    # Row tests are plain comparisons on the flat pixel index, col is a tiled iota.
    pos = jax.lax.broadcasted_iota(jnp.int32, (1, HW), 1)
    col = jnp.tile(jax.lax.broadcasted_iota(jnp.int32, (1, width), 1), (1, height))
    row_ge_1 = pos >= width                      # h >= 1
    row_le_hm2 = pos < (height - 1) * width      # h <= H-2
    col_ge_1 = col >= 1                          # w >= 1
    col_le_wm2 = col <= width - 2                # w <= W-2

    def tap_mask(dh, dw):
        conds = []
        if dh == -1:
            conds.append(row_ge_1)
        elif dh == 1:
            conds.append(row_le_hm2)
        if dw == -1:
            conds.append(col_ge_1)
        elif dw == 1:
            conds.append(col_le_wm2)
        m = conds[0]
        for extra in conds[1:]:
            m = jnp.logical_and(m, extra)
        return m.astype(f32)

    taps = [(dh, dw) for dh in (-1, 0, 1) for dw in (-1, 0, 1)]
    masks = {t: tap_mask(*t) for t in taps if t != (0, 0)}

    w2 = w_ref[...]       # (cout, 9*cin), already carries exp(logs*3)
    bias = b_ref[...]     # (cout, 1),     already carries exp(logs*3)

    ll_rows = []
    for b in range(bt):                          # bt <= 8: short unrolled loop
        z1 = x_ref[b, :cin, :].astype(f32)       # (cin,   HW) channels-on-sublanes
        z2 = x_ref[b, cin:, :].astype(f32)       # (chalf, HW)

        # im2col: one XLU lane-rotation per tap covers all cin channels at once;
        # wrapped / out-of-image taps are zeroed by the border masks.
        cols = []
        for (dh, dw) in taps:
            off = dh * width + dw                # want y[p] = z1[p + off]
            if off == 0:
                shifted = z1
            else:
                shifted = pltpu.roll(z1, shift=(-off) % HW, axis=1)
            if (dh, dw) != (0, 0):
                shifted = shifted * masks[(dh, dw)]
            cols.append(shifted)
        a_mat = jnp.concatenate(cols, axis=0)    # (9*cin, HW)

        # 3x3 SAME conv == a single MXU contraction over K = 9*cin.
        conv_b = jnp.dot(w2, a_mat, preferred_element_type=jnp.float32) + bias
        if return_conv:
            conv_ref[b, :, :] = conv_b

        # Gaussian log-likelihood of z2 under (mean, log_sd), fused while
        # conv_b is still live (no store-then-reload through VMEM).
        mean = conv_b[:chalf, :]
        log_sd = conv_b[chalf:, :]
        diff = z2 - mean
        ll = -log_sd - 0.5 * (diff * diff) * jnp.exp(-2.0 * log_sd)
        ll_rows.append(jnp.sum(ll, axis=0, keepdims=True))   # (1, HW)

    ll_all = ll_rows[0] if bt == 1 else jnp.concatenate(ll_rows, axis=0)  # (bt, HW)
    const = (-0.5 * LOG2PI) * chalf * HW          # hoisted constant term
    ld_out_ref[:, 0, :] = (ld_in_ref[:, 0, :]
                           + jnp.sum(ll_all, axis=1, keepdims=True) + const)


@functools.partial(jax.jit, static_argnames=("batch_block", "return_conv"))
def split_forward(x, log_det, weight, bias, logs, *, batch_block=8,
                  return_conv=False):
    """Forward (training) mode of Split.  x is NCHW; weight is OIHW (PyTorch)."""
    B, C, H, W = x.shape
    chalf = C // 2
    cin, cout = chalf, C
    HW = H * W
    bt = min(batch_block, B)
    assert B % bt == 0, (B, bt)
    assert weight.shape == (cout, cin, KSIZE, KSIZE)

    # Free (bitcast-able) reshapes only -- no transpose / pad HBM passes on x.
    x_flat = x.reshape(B, C, HW)
    ld_in = log_det.reshape(B, 1, 1).astype(jnp.float32)

    # Fold exp(logs*3) into the tiny weight/bias tables; pack the weight as
    # (cout, 9*cin), tap-major / channel-minor, matching the kernel's im2col.
    scale = jnp.exp(logs.reshape(cout).astype(jnp.float32) * LOG_SCALE_FACTOR)
    w_scaled = weight.astype(jnp.float32) * scale[:, None, None, None]
    w2 = jnp.transpose(w_scaled, (0, 2, 3, 1)).reshape(cout, KSIZE * KSIZE * cin)
    b2 = (bias.astype(jnp.float32).reshape(cout) * scale).reshape(cout, 1)

    grid = (B // bt,)
    kernel = functools.partial(_split_fwd_kernel, height=H, width=W,
                               return_conv=return_conv)

    in_specs = [
        pl.BlockSpec((bt, C, HW), lambda b: (b, 0, 0)),               # x (z1 ++ z2)
        pl.BlockSpec((cout, KSIZE * KSIZE * cin), lambda b: (0, 0)),  # weight (resident)
        pl.BlockSpec((cout, 1), lambda b: (0, 0)),                    # bias (resident)
        pl.BlockSpec((bt, 1, 1), lambda b: (b, 0, 0)),                # log_det in
    ]
    out_specs = [pl.BlockSpec((bt, 1, 1), lambda b: (b, 0, 0))]       # log_det out
    out_shape = [jax.ShapeDtypeStruct((B, 1, 1), jnp.float32)]
    if return_conv:
        out_specs = [pl.BlockSpec((bt, cout, HW), lambda b: (b, 0, 0))] + out_specs
        out_shape = [jax.ShapeDtypeStruct((B, cout, HW), jnp.float32)] + out_shape

    # Explicit VMEM budget: double-buffered blocks + in-kernel im2col / conv
    # intermediates, capped at 40 MiB so the same code also fits v7x (64 MiB/TC)
    # while still lifting v5e's 16 MiB default scoped limit when needed.
    x_bytes = bt * C * HW * x.dtype.itemsize
    conv_bytes = bt * cout * HW * 4 if return_conv else 0
    interm_bytes = (KSIZE * KSIZE * cin + 2 * cout + 8) * HW * 4
    vmem_bytes = int(min(max(2 * (x_bytes + conv_bytes) + 2 * interm_bytes
                             + (2 << 20), 16 << 20), 40 << 20))

    outs = pl.pallas_call(
        kernel,
        grid=grid,
        in_specs=in_specs,
        out_specs=tuple(out_specs),
        out_shape=tuple(out_shape),
        compiler_params=pltpu.CompilerParams(
            dimension_semantics=("parallel",),   # v7x: batch tiles split over 2 TCs
            vmem_limit_bytes=vmem_bytes),
    )(x_flat, w2, b2, ld_in)

    if return_conv:
        conv_flat, ld_out = outs
        conv_nchw = conv_flat.reshape(B, cout, H, W)
    else:
        (ld_out,) = outs
        conv_nchw = None

    z1 = x[:, :chalf]
    z2 = x[:, chalf:]
    return (z1, z2), ld_out.reshape(B), conv_nchw


def reference_forward(x, log_det, weight, bias, logs):
    """Pure-JAX/XLA reference mirroring the PyTorch forward (NCHW)."""
    B, C, H, W = x.shape
    chalf = C // 2
    z1, z2 = x[:, :chalf], x[:, chalf:]
    out = jax.lax.conv_general_dilated(
        z1, weight, window_strides=(1, 1), padding=((1, 1), (1, 1)),
        dimension_numbers=("NCHW", "OIHW", "NCHW"))
    out = out + bias[None, :, None, None]
    out = out * jnp.exp(logs[None, :, None, None] * LOG_SCALE_FACTOR)
    mean, log_sd = out[:, :chalf], out[:, chalf:]
    ll = -0.5 * LOG2PI - log_sd - 0.5 * (z2 - mean) ** 2 / jnp.exp(2.0 * log_sd)
    return out, log_det + ll.reshape(B, -1).sum(1)


if __name__ == "__main__":
    # Split(in_channels=4, split=True, kernel_size=3, stride=1)
    B, C, H, W = 2, 4, 16, 16
    cin, cout = C // 2, C

    key = jax.random.PRNGKey(0)
    kx, kw, kb, kl = jax.random.split(key, 4)
    x = jax.random.normal(kx, (B, C, H, W), dtype=jnp.float32)
    log_det = jnp.zeros((B,), dtype=jnp.float32)

    # The real module zero-inits (ZeroConv2d); use small deterministic values
    # so the kernel actually exercises the compute.  logs is (Cout,1,1) in the
    # module; stored flat as (Cout,) here.
    weight = 0.05 * jax.random.normal(kw, (cout, cin, KSIZE, KSIZE), dtype=jnp.float32)
    bias = 0.05 * jax.random.normal(kb, (cout,), dtype=jnp.float32)
    logs = 0.05 * jax.random.normal(kl, (cout,), dtype=jnp.float32)

    # Debug path: also returns the conv (mean ++ log_sd) plane for checking.
    (z1, z2), ld_dbg, conv_out = split_forward(
        x, log_det, weight, bias, logs, batch_block=8, return_conv=True)
    # Production path: conv plane never leaves VMEM (half the HBM traffic).
    (_, _), ld_new, _ = split_forward(
        x, log_det, weight, bias, logs, batch_block=8, return_conv=False)
    jax.block_until_ready(ld_new)
    jax.block_until_ready(ld_dbg)

    # Correctness check against plain-XLA reference.  The MXU matmul may run at
    # bf16 operand precision under the default matmul precision, so tolerances
    # are sized for that; genuine bugs (wrong tap/mask/weight packing) would be
    # orders of magnitude off.
    conv_ref, ld_ref = reference_forward(x, log_det, weight, bias, logs)
    assert np.allclose(np.asarray(z1), np.asarray(x[:, :C // 2]))
    assert np.allclose(np.asarray(z2), np.asarray(x[:, C // 2:]))
    assert np.allclose(np.asarray(conv_out), np.asarray(conv_ref), atol=5e-3, rtol=1e-2)
    assert np.allclose(np.asarray(ld_dbg), np.asarray(ld_ref), atol=0.5, rtol=5e-3)
    assert np.allclose(np.asarray(ld_new), np.asarray(ld_dbg), atol=1e-3, rtol=1e-5)

    # TODO(synk): reverse-mode branch (gaussian_sample via torch.normal) not
    # implemented; only the forward/training path is kernelized.
    print("KERNEL_OK")
</pallas_src>

<mosaic_0001>
module attributes {stable_mosaic.version = 11 : i64} {
  func.func @_split_fwd_kernel(%arg0: i32, %arg1: memref<2x4x256xf32, #tpu.memory_space<vmem>>, %arg2: memref<4x18xf32, #tpu.memory_space<vmem>>, %arg3: memref<4x1xf32, #tpu.memory_space<vmem>>, %arg4: memref<2x1x1xf32, #tpu.memory_space<vmem>>, %arg5: memref<2x4x256xf32, #tpu.memory_space<vmem>>, %arg6: memref<2x1x1xf32, #tpu.memory_space<vmem>>) attributes {dimension_semantics = [#tpu.dimension_semantics<parallel>], iteration_bounds = array<i64: 1>, scalar_prefetch = 0 : i64, scratch_operands = 0 : i64, tpu.core_type = #tpu.core_type<tc>, window_params = [{transform_indices = @transform_0, window_bounds = array<i64: 2, 4, 256>}, {pipeline_mode = #tpu.pipeline_mode<synchronous>, transform_indices = @transform_1, window_bounds = array<i64: 4, 18>}, {pipeline_mode = #tpu.pipeline_mode<synchronous>, transform_indices = @transform_2, window_bounds = array<i64: 4, 1>}, {transform_indices = @transform_3, window_bounds = array<i64: 2, 1, 1>}, {transform_indices = @transform_4, window_bounds = array<i64: 2, 4, 256>}, {transform_indices = @transform_5, window_bounds = array<i64: 2, 1, 1>}]} {
    %0 = tpu.iota {dimensions = array<i32: 1>} : vector<1x256xi32>
    %1 = tpu.iota {dimensions = array<i32: 1>} : vector<1x16xi32>
    %2 = tpu.concatenate %1, %1, %1, %1, %1, %1, %1, %1, %1, %1, %1, %1, %1, %1, %1, %1 in 1 : vector<1x16xi32>, vector<1x16xi32>, vector<1x16xi32>, vector<1x16xi32>, vector<1x16xi32>, vector<1x16xi32>, vector<1x16xi32>, vector<1x16xi32>, vector<1x16xi32>, vector<1x16xi32>, vector<1x16xi32>, vector<1x16xi32>, vector<1x16xi32>, vector<1x16xi32>, vector<1x16xi32>, vector<1x16xi32> -> vector<1x256xi32>
    %c16_i32 = arith.constant 16 : i32
    %3 = vector.broadcast %c16_i32 : i32 to vector<1x256xi32>
    %4 = arith.cmpi sge, %0, %3 : vector<1x256xi32>
    %c240_i32 = arith.constant 240 : i32
    %5 = vector.broadcast %c240_i32 : i32 to vector<1x256xi32>
    %6 = arith.cmpi slt, %0, %5 : vector<1x256xi32>
    %c1_i32 = arith.constant 1 : i32
    %7 = vector.broadcast %c1_i32 : i32 to vector<1x256xi32>
    %8 = arith.cmpi sge, %2, %7 : vector<1x256xi32>
    %c14_i32 = arith.constant 14 : i32
    %9 = vector.broadcast %c14_i32 : i32 to vector<1x256xi32>
    %10 = arith.cmpi sle, %2, %9 : vector<1x256xi32>
    %11 = arith.andi %4, %8 : vector<1x256xi1>
    %12 = arith.extui %11 : vector<1x256xi1> to vector<1x256xi32>
    %13 = arith.sitofp %12 : vector<1x256xi32> to vector<1x256xf32>
    %14 = arith.extui %4 : vector<1x256xi1> to vector<1x256xi32>
    %15 = arith.sitofp %14 : vector<1x256xi32> to vector<1x256xf32>
    %16 = arith.andi %4, %10 : vector<1x256xi1>
    %17 = arith.extui %16 : vector<1x256xi1> to vector<1x256xi32>
    %18 = arith.sitofp %17 : vector<1x256xi32> to vector<1x256xf32>
    %19 = arith.extui %8 : vector<1x256xi1> to vector<1x256xi32>
    %20 = arith.sitofp %19 : vector<1x256xi32> to vector<1x256xf32>
    %21 = arith.extui %10 : vector<1x256xi1> to vector<1x256xi32>
    %22 = arith.sitofp %21 : vector<1x256xi32> to vector<1x256xf32>
    %23 = arith.andi %6, %8 : vector<1x256xi1>
    %24 = arith.extui %23 : vector<1x256xi1> to vector<1x256xi32>
    %25 = arith.sitofp %24 : vector<1x256xi32> to vector<1x256xf32>
    %26 = arith.extui %6 : vector<1x256xi1> to vector<1x256xi32>
    %27 = arith.sitofp %26 : vector<1x256xi32> to vector<1x256xf32>
    %28 = arith.andi %6, %10 : vector<1x256xi1>
    %29 = arith.extui %28 : vector<1x256xi1> to vector<1x256xi32>
    %30 = arith.sitofp %29 : vector<1x256xi32> to vector<1x256xf32>
    %c0 = arith.constant 0 : index
    %c0_0 = arith.constant 0 : index
    %31 = vector.load %arg2[%c0, %c0_0] : memref<4x18xf32, #tpu.memory_space<vmem>>, vector<4x18xf32>
    %c0_1 = arith.constant 0 : index
    %c0_2 = arith.constant 0 : index
    %32 = vector.load %arg3[%c0_1, %c0_2] : memref<4x1xf32, #tpu.memory_space<vmem>>, vector<4x1xf32>
    %c0_3 = arith.constant 0 : index
    %c0_4 = arith.constant 0 : index
    %c0_5 = arith.constant 0 : index
    %33 = vector.load %arg1[%c0_3, %c0_4, %c0_5] : memref<2x4x256xf32, #tpu.memory_space<vmem>>, vector<1x2x256xf32>
    %34 = vector.shape_cast %33 : vector<1x2x256xf32> to vector<2x256xf32>
    %c0_6 = arith.constant 0 : index
    %c2 = arith.constant 2 : index
    %c0_7 = arith.constant 0 : index
    %35 = vector.load %arg1[%c0_6, %c2, %c0_7] : memref<2x4x256xf32, #tpu.memory_space<vmem>>, vector<1x2x256xf32>
    %36 = vector.shape_cast %35 : vector<1x2x256xf32> to vector<2x256xf32>
    %c17_i32 = arith.constant 17 : i32
    %37 = tpu.dynamic_rotate %34 by %c17_i32 dim 1 : vector<2x256xf32>, i32 -> vector<2x256xf32>
    %38 = vector.broadcast %13 : vector<1x256xf32> to vector<2x256xf32>
    %39 = arith.mulf %37, %38 : vector<2x256xf32>
    %c16_i32_8 = arith.constant 16 : i32
    %40 = tpu.dynamic_rotate %34 by %c16_i32_8 dim 1 : vector<2x256xf32>, i32 -> vector<2x256xf32>
    %41 = vector.broadcast %15 : vector<1x256xf32> to vector<2x256xf32>
    %42 = arith.mulf %40, %41 : vector<2x256xf32>
    %c15_i32 = arith.constant 15 : i32
    %43 = tpu.dynamic_rotate %34 by %c15_i32 dim 1 : vector<2x256xf32>, i32 -> vector<2x256xf32>
    %44 = vector.broadcast %18 : vector<1x256xf32> to vector<2x256xf32>
    %45 = arith.mulf %43, %44 : vector<2x256xf32>
    %c1_i32_9 = arith.constant 1 : i32
    %46 = tpu.dynamic_rotate %34 by %c1_i32_9 dim 1 : vector<2x256xf32>, i32 -> vector<2x256xf32>
    %47 = vector.broadcast %20 : vector<1x256xf32> to vector<2x256xf32>
    %48 = arith.mulf %46, %47 : vector<2x256xf32>
    %c255_i32 = arith.constant 255 : i32
    %49 = tpu.dynamic_rotate %34 by %c255_i32 dim 1 : vector<2x256xf32>, i32 -> vector<2x256xf32>
    %50 = vector.broadcast %22 : vector<1x256xf32> to vector<2x256xf32>
    %51 = arith.mulf %49, %50 : vector<2x256xf32>
    %c241_i32 = arith.constant 241 : i32
    %52 = tpu.dynamic_rotate %34 by %c241_i32 dim 1 : vector<2x256xf32>, i32 -> vector<2x256xf32>
    %53 = vector.broadcast %25 : vector<1x256xf32> to vector<2x256xf32>
    %54 = arith.mulf %52, %53 : vector<2x256xf32>
    %c240_i32_10 = arith.constant 240 : i32
    %55 = tpu.dynamic_rotate %34 by %c240_i32_10 dim 1 : vector<2x256xf32>, i32 -> vector<2x256xf32>
    %56 = vector.broadcast %27 : vector<1x256xf32> to vector<2x256xf32>
    %57 = arith.mulf %55, %56 : vector<2x256xf32>
    %c239_i32 = arith.constant 239 : i32
    %58 = tpu.dynamic_rotate %34 by %c239_i32 dim 1 : vector<2x256xf32>, i32 -> vector<2x256xf32>
    %59 = vector.broadcast %30 : vector<1x256xf32> to vector<2x256xf32>
    %60 = arith.mulf %58, %59 : vector<2x256xf32>
    %61 = tpu.concatenate %39, %42, %45, %48, %34, %51, %54, %57, %60 in 0 : vector<2x256xf32>, vector<2x256xf32>, vector<2x256xf32>, vector<2x256xf32>, vector<2x256xf32>, vector<2x256xf32>, vector<2x256xf32>, vector<2x256xf32>, vector<2x256xf32> -> vector<18x256xf32>
    %cst = arith.constant dense<0.000000e+00> : vector<4x256xf32>
    %62 = tpu.matmul %31, %61, %cst {dimension_numbers = #tpu.dot_dimension_numbers<[1], [0], [0], [1], [0, 0, 1, 1], [], []>} : vector<4x18xf32>, vector<18x256xf32>, vector<4x256xf32> -> vector<4x256xf32>
    %63 = vector.broadcast %32 : vector<4x1xf32> to vector<4x256xf32>
    %64 = arith.addf %62, %63 : vector<4x256xf32>
    %c0_11 = arith.constant 0 : index
    %c0_12 = arith.constant 0 : index
    %c0_13 = arith.constant 0 : index
    %65 = vector.load %arg5[%c0_11, %c0_12, %c0_13] : memref<2x4x256xf32, #tpu.memory_space<vmem>>, vector<1x4x256xf32>
    %66 = vector.shape_cast %65 : vector<1x4x256xf32> to vector<4x256xf32>
    %67 = vector.shape_cast %64 : vector<4x256xf32> to vector<1x4x256xf32>
    tpu.vector_store %arg5[%c0_11, %c0_12, %c0_13], %67 {strides = array<i32>} : memref<2x4x256xf32, #tpu.memory_space<vmem>>, vector<1x4x256xf32>,
    %68 = vector.extract_strided_slice %64 {offsets = [0, 0], sizes = [2, 256], strides = [1, 1]} : vector<4x256xf32> to vector<2x256xf32>
    %69 = vector.extract_strided_slice %64 {offsets = [2, 0], sizes = [2, 256], strides = [1, 1]} : vector<4x256xf32> to vector<2x256xf32>
    %70 = arith.subf %36, %68 : vector<2x256xf32>
    %cst_14 = arith.constant 0.000000e+00 : f32
    %71 = vector.broadcast %cst_14 : f32 to vector<2x256xf32>
    %72 = arith.subf %71, %69 : vector<2x256xf32>
    %73 = arith.mulf %70, %70 : vector<2x256xf32>
    %cst_15 = arith.constant 5.000000e-01 : f32
    %74 = vector.broadcast %cst_15 : f32 to vector<2x256xf32>
    %75 = arith.mulf %74, %73 : vector<2x256xf32>
    %cst_16 = arith.constant -2.000000e+00 : f32
    %76 = vector.broadcast %cst_16 : f32 to vector<2x256xf32>
    %77 = arith.mulf %76, %69 : vector<2x256xf32>
    %78 = math.exp %77 : vector<2x256xf32>
    %79 = arith.mulf %75, %78 : vector<2x256xf32>
    %80 = arith.subf %72, %79 : vector<2x256xf32>
    %cst_17 = arith.constant dense<0.000000e+00> : vector<256xf32>
    %81 = vector.multi_reduction <add>, %80, %cst_17 [0] : vector<2x256xf32> to vector<256xf32>
    %82 = vector.shape_cast %81 : vector<256xf32> to vector<1x256xf32>
    %c1 = arith.constant 1 : index
    %c0_18 = arith.constant 0 : index
    %c0_19 = arith.constant 0 : index
    %83 = vector.load %arg1[%c1, %c0_18, %c0_19] : memref<2x4x256xf32, #tpu.memory_space<vmem>>, vector<1x2x256xf32>
    %84 = vector.shape_cast %83 : vector<1x2x256xf32> to vector<2x256xf32>
    %c1_20 = arith.constant 1 : index
    %c2_21 = arith.constant 2 : index
    %c0_22 = arith.constant 0 : index
    %85 = vector.load %arg1[%c1_20, %c2_21, %c0_22] : memref<2x4x256xf32, #tpu.memory_space<vmem>>, vector<1x2x256xf32>
    %86 = vector.shape_cast %85 : vector<1x2x256xf32> to vector<2x256xf32>
    %c17_i32_23 = arith.constant 17 : i32
    %87 = tpu.dynamic_rotate %84 by %c17_i32_23 dim 1 : vector<2x256xf32>, i32 -> vector<2x256xf32>
    %88 = vector.broadcast %13 : vector<1x256xf32> to vector<2x256xf32>
    %89 = arith.mulf %87, %88 : vector<2x256xf32>
    %c16_i32_24 = arith.constant 16 : i32
    %90 = tpu.dynamic_rotate %84 by %c16_i32_24 dim 1 : vector<2x256xf32>, i32 -> vector<2x256xf32>
    %91 = vector.broadcast %15 : vector<1x256xf32> to vector<2x256xf32>
    %92 = arith.mulf %90, %91 : vector<2x256xf32>
    %c15_i32_25 = arith.constant 15 : i32
    %93 = tpu.dynamic_rotate %84 by %c15_i32_25 dim 1 : vector<2x256xf32>, i32 -> vector<2x256xf32>
    %94 = vector.broadcast %18 : vector<1x256xf32> to vector<2x256xf32>
    %95 = arith.mulf %93, %94 : vector<2x256xf32>
    %c1_i32_26 = arith.constant 1 : i32
    %96 = tpu.dynamic_rotate %84 by %c1_i32_26 dim 1 : vector<2x256xf32>, i32 -> vector<2x256xf32>
    %97 = vector.broadcast %20 : vector<1x256xf32> to vector<2x256xf32>
    %98 = arith.mulf %96, %97 : vector<2x256xf32>
    %c255_i32_27 = arith.constant 255 : i32
    %99 = tpu.dynamic_rotate %84 by %c255_i32_27 dim 1 : vector<2x256xf32>, i32 -> vector<2x256xf32>
    %100 = vector.broadcast %22 : vector<1x256xf32> to vector<2x256xf32>
    %101 = arith.mulf %99, %100 : vector<2x256xf32>
    %c241_i32_28 = arith.constant 241 : i32
    %102 = tpu.dynamic_rotate %84 by %c241_i32_28 dim 1 : vector<2x256xf32>, i32 -> vector<2x256xf32>
    %103 = vector.broadcast %25 : vector<1x256xf32> to vector<2x256xf32>
    %104 = arith.mulf %102, %103 : vector<2x256xf32>
    %c240_i32_29 = arith.constant 240 : i32
    %105 = tpu.dynamic_rotate %84 by %c240_i32_29 dim 1 : vector<2x256xf32>, i32 -> vector<2x256xf32>
    %106 = vector.broadcast %27 : vector<1x256xf32> to vector<2x256xf32>
    %107 = arith.mulf %105, %106 : vector<2x256xf32>
    %c239_i32_30 = arith.constant 239 : i32
    %108 = tpu.dynamic_rotate %84 by %c239_i32_30 dim 1 : vector<2x256xf32>, i32 -> vector<2x256xf32>
    %109 = vector.broadcast %30 : vector<1x256xf32> to vector<2x256xf32>
    %110 = arith.mulf %108, %109 : vector<2x256xf32>
    %111 = tpu.concatenate %89, %92, %95, %98, %84, %101, %104, %107, %110 in 0 : vector<2x256xf32>, vector<2x256xf32>, vector<2x256xf32>, vector<2x256xf32>, vector<2x256xf32>, vector<2x256xf32>, vector<2x256xf32>, vector<2x256xf32>, vector<2x256xf32> -> vector<18x256xf32>
    %cst_31 = arith.constant dense<0.000000e+00> : vector<4x256xf32>
    %112 = tpu.matmul %31, %111, %cst_31 {dimension_numbers = #tpu.dot_dimension_numbers<[1], [0], [0], [1], [0, 0, 1, 1], [], []>} : vector<4x18xf32>, vector<18x256xf32>, vector<4x256xf32> -> vector<4x256xf32>
    %113 = vector.broadcast %32 : vector<4x1xf32> to vector<4x256xf32>
    %114 = arith.addf %112, %113 : vector<4x256xf32>
    %c1_32 = arith.constant 1 : index
    %c0_33 = arith.constant 0 : index
    %c0_34 = arith.constant 0 : index
    %115 = vector.load %arg5[%c1_32, %c0_33, %c0_34] : memref<2x4x256xf32, #tpu.memory_space<vmem>>, vector<1x4x256xf32>
    %116 = vector.shape_cast %115 : vector<1x4x256xf32> to vector<4x256xf32>
    %117 = vector.shape_cast %114 : vector<4x256xf32> to vector<1x4x256xf32>
    tpu.vector_store %arg5[%c1_32, %c0_33, %c0_34], %117 {strides = array<i32>} : memref<2x4x256xf32, #tpu.memory_space<vmem>>, vector<1x4x256xf32>,
    %118 = vector.extract_strided_slice %114 {offsets = [0, 0], sizes = [2, 256], strides = [1, 1]} : vector<4x256xf32> to vector<2x256xf32>
    %119 = vector.extract_strided_slice %114 {offsets = [2, 0], sizes = [2, 256], strides = [1, 1]} : vector<4x256xf32> to vector<2x256xf32>
    %120 = arith.subf %86, %118 : vector<2x256xf32>
    %cst_35 = arith.constant 0.000000e+00 : f32
    %121 = vector.broadcast %cst_35 : f32 to vector<2x256xf32>
    %122 = arith.subf %121, %119 : vector<2x256xf32>
    %123 = arith.mulf %120, %120 : vector<2x256xf32>
    %cst_36 = arith.constant 5.000000e-01 : f32
    %124 = vector.broadcast %cst_36 : f32 to vector<2x256xf32>
    %125 = arith.mulf %124, %123 : vector<2x256xf32>
    %cst_37 = arith.constant -2.000000e+00 : f32
    %126 = vector.broadcast %cst_37 : f32 to vector<2x256xf32>
    %127 = arith.mulf %126, %119 : vector<2x256xf32>
    %128 = math.exp %127 : vector<2x256xf32>
    %129 = arith.mulf %125, %128 : vector<2x256xf32>
    %130 = arith.subf %122, %129 : vector<2x256xf32>
    %cst_38 = arith.constant dense<0.000000e+00> : vector<256xf32>
    %131 = vector.multi_reduction <add>, %130, %cst_38 [0] : vector<2x256xf32> to vector<256xf32>
    %132 = vector.shape_cast %131 : vector<256xf32> to vector<1x256xf32>
    %133 = tpu.concatenate %82, %132 in 0 : vector<1x256xf32>, vector<1x256xf32> -> vector<2x256xf32>
    %c0_39 = arith.constant 0 : index
    %c0_40 = arith.constant 0 : index
    %c0_41 = arith.constant 0 : index
    %134 = vector.load %arg4[%c0_39, %c0_40, %c0_41] : memref<2x1x1xf32, #tpu.memory_space<vmem>>, vector<2x1x1xf32>
    %135 = vector.shape_cast %134 : vector<2x1x1xf32> to vector<2x1xf32>
    %cst_42 = arith.constant dense<0.000000e+00> : vector<2xf32>
    %136 = vector.multi_reduction <add>, %133, %cst_42 [1] : vector<2x256xf32> to vector<2xf32>
    %137 = vector.shape_cast %136 : vector<2xf32> to vector<2x1xf32>
    %138 = arith.addf %135, %137 : vector<2x1xf32>
    %cst_43 = arith.constant -470.496521 : f32
    %139 = vector.broadcast %cst_43 : f32 to vector<2x1xf32>
    %140 = arith.addf %138, %139 : vector<2x1xf32>
    %c0_44 = arith.constant 0 : index
    %c0_45 = arith.constant 0 : index
    %c0_46 = arith.constant 0 : index
    %141 = vector.load %arg6[%c0_44, %c0_45, %c0_46] : memref<2x1x1xf32, #tpu.memory_space<vmem>>, vector<2x1x1xf32>
    %142 = vector.shape_cast %141 : vector<2x1x1xf32> to vector<2x1xf32>
    %143 = vector.shape_cast %140 : vector<2x1xf32> to vector<2x1x1xf32>
    tpu.vector_store %arg6[%c0_44, %c0_45, %c0_46], %143 {strides = array<i32>} : memref<2x1x1xf32, #tpu.memory_space<vmem>>, vector<2x1x1xf32>,
    return
  }
  func.func @transform_0(%arg0: i32) -> (i32, i32, i32) {
    %c0_i32 = arith.constant 0 : i32
    %c0_i32_0 = arith.constant 0 : i32
    %c0_i32_1 = arith.constant 0 : i32
    return %arg0, %c0_i32, %c0_i32_0 : i32, i32, i32
  }
  func.func @transform_1(%arg0: i32) -> (i32, i32) {
    %c0_i32 = arith.constant 0 : i32
    %c0_i32_0 = arith.constant 0 : i32
    %c0_i32_1 = arith.constant 0 : i32
    return %c0_i32, %c0_i32_0 : i32, i32
  }
  func.func @transform_2(%arg0: i32) -> (i32, i32) {
    %c0_i32 = arith.constant 0 : i32
    %c0_i32_0 = arith.constant 0 : i32
    %c0_i32_1 = arith.constant 0 : i32
    return %c0_i32, %c0_i32_0 : i32, i32
  }
  func.func @transform_3(%arg0: i32) -> (i32, i32, i32) {
    %c0_i32 = arith.constant 0 : i32
    %c0_i32_0 = arith.constant 0 : i32
    %c0_i32_1 = arith.constant 0 : i32
    return %arg0, %c0_i32, %c0_i32_0 : i32, i32, i32
  }
  func.func @transform_4(%arg0: i32) -> (i32, i32, i32) {
    %c0_i32 = arith.constant 0 : i32
    %c0_i32_0 = arith.constant 0 : i32
    %c0_i32_1 = arith.constant 0 : i32
    return %arg0, %c0_i32, %c0_i32_0 : i32, i32, i32
  }
  func.func @transform_5(%arg0: i32) -> (i32, i32, i32) {
    %c0_i32 = arith.constant 0 : i32
    %c0_i32_0 = arith.constant 0 : i32
    %c0_i32_1 = arith.constant 0 : i32
    return %arg0, %c0_i32, %c0_i32_0 : i32, i32, i32
  }
}

</mosaic_0001>

<bundles_post_ra>
// kernel: split_forward.1
= control target key start
LH: loop header
LB: loop body
LE: loop exit
PB: predicated region body
PF: predicated region fallthrough
CT: control target
= control target key end

     0   :  { %v19_v0 = vlaneseq  ;;  %s732_s18 = smov 16   ;;  %s733_s19 = smov 48   ;;  %v734_v2 = vmov 0.0   ;;  %v746_v7 = vmov 0   ;;  %vm36_vm0 = vcmask 130048   ;;  %s1128_s0 = inlined_call_operand.vmem [shape: f32[2,4,256], index: 0, kind: input, shape index: {}]   ;;  %s1129_s2 = inlined_call_operand.vmem [shape: f32[4,1], index: 2, kind: input, shape index: {}]   ;;  %s1130_s1 = inlined_call_operand.vmem [shape: f32[4,18], index: 1, kind: input, shape index: {}]   ;;  %s1131_s4 = inlined_call_operand.vmem [shape: f32[2,4,256], index: 4, kind: output, shape index: {0}]   ;;  %s1132_s3 = inlined_call_operand.vmem [shape: f32[2,1,1], index: 3, kind: input, shape index: {}]   ;;  %s1133_s5 = inlined_call_operand.vmem [shape: f32[2,1,1], index: 5, kind: output, shape index: {1}]  }
   0x1   :  { %341 = vmatprep.mubr.f32.mxu0 %v734_v2  ;;  %584 = vmatprep.mubr.f32.mxu1 %v734_v2  ;;  %s735_s20 = smov 32   ;;  %s736_s21 = smov 64   ;;  %v792_v3 = vld [vmem:[%s1128_s0] sm:$0x33]  ;;  %v804_v5 = vld [vmem:[%s1128_s0 + $0x8] sm:$0x33] }
   0x2   :  { %v778_v1 = vand.u32 127, %v19_v0  ;;  %s737_s22 = smov 80   ;;  %s738_s23 = smov 96   ;;  %v799_v4 = vcombine.high %v792_v3, %v792_v3  ;;  %v810_v6 = vcombine.high %v804_v5, %v804_v5  ;;  %720 = vset.pattern.permute.xlu1 %v746_v7  ;;  %721 = vset.pattern.permute.xlu0 %v746_v7  ;;  %v93_v8 = vld [vmem:[%s1129_s2] sm:$0xf]  ;;  %vm38_vm1 = vcmask 261120  }
   0x3   :  { %s739_s26 = smov 112   ;;  %s740_s27 = smov 127   ;;  %vm40_vm2 = vcmask 392192   ;;  %vm42_vm3 = vcmask 523264   ;;  %vm44_vm4 = vcmask 654336   ;;  %vm46_vm5 = vcmask 785408  }
   0x4   :  { %22 = vrot.lane.b32.xlu0 %v778_v1, %s732_s18  ;;  %26 = vrot.lane.b32.xlu1 %v778_v1, %s733_s19  ;;  %s741_s30 = smov 15   ;;  %s742_s6 = smov 113   ;;  %vm48_vm6 = vcmask 916480   ;;  %v866_v34 = vshrl.u32 %v19_v0, 7  ;;  %v21_v35 = vadd.s32 128, %v778_v1  ;;  %vm50_vm8 = vcmp.ge.s32.totalorder %v778_v1, 16 }
   0x5   :  { %s743_s7 = smov 17   ;;  %s744_s8 = smov 1   ;;  %vm159_vm12 = vcmp.lt.s32.totalorder %v778_v1, 127  ;;  %v900_v46 = vsel %vm50_vm8, 1.0, %v734_v2  ;;  %vm120_vm15 = vcmp.lt.s32.totalorder %v778_v1, 16 }
   0x6   :  { %s745_s9 = smov 111   ;;  %v875_v38 = vsub.s32 0, %v866_v34  ;;  %vm53_vm10 = vcmp.lt.s32.totalorder %v21_v35, 240 }
   0x7   :  { %v926_v56 = vsel %vm53_vm10, 1.0, %v734_v2 }
   0x8   :  { %24 = vrot.lane.b32.xlu0 %v778_v1, %s735_s20  ;;  %28 = vrot.lane.b32.xlu1 %v778_v1, %s736_s21 }
   0xc   :  { %30 = vrot.lane.b32.xlu0 %v778_v1, %s737_s22  ;;  %32 = vrot.lane.b32.xlu1 %v778_v1, %s738_s23 }
  0x10   :  { %34 = vrot.lane.b32.xlu0 %v778_v1, %s739_s26  ;;  %155 = vrot.lane.b32.xlu1 %v792_v3, %s740_s27 }
  0x14   :  { %157 = vrot.lane.b32.xlu0 %v799_v4, %s740_s27  ;;  %434 = vrot.lane.b32.xlu1 %v804_v5, %s740_s27 }
  0x18   :  { %436 = vrot.lane.b32.xlu0 %v810_v6, %s740_s27  ;;  %116 = vrot.lane.b32.xlu1 %v792_v3, %s732_s18 }
  0x1c   :  { %118 = vrot.lane.b32.xlu0 %v799_v4, %s732_s18  ;;  %125 = vrot.lane.b32.xlu1 %v792_v3, %s741_s30 }
  0x20   :  { %127 = vrot.lane.b32.xlu0 %v799_v4, %s741_s30  ;;  %168 = vrot.lane.b32.xlu1 %v792_v3, %s742_s6 }
  0x24   :  { %170 = vrot.lane.b32.xlu0 %v799_v4, %s742_s6  ;;  %410 = vrot.lane.b32.xlu1 %v804_v5, %s732_s18 }
  0x28   :  { %412 = vrot.lane.b32.xlu0 %v810_v6, %s732_s18  ;;  %418 = vrot.lane.b32.xlu1 %v804_v5, %s741_s30 }
  0x2c   :  { %420 = vrot.lane.b32.xlu0 %v810_v6, %s741_s30  ;;  %442 = vrot.lane.b32.xlu1 %v804_v5, %s742_s6 }
  0x30   :  { %444 = vrot.lane.b32.xlu0 %v810_v6, %s742_s6  ;;  %99 = vrot.lane.b32.xlu1 %v792_v3, %s743_s7 }
  0x34   :  { %101 = vrot.lane.b32.xlu0 %v799_v4, %s743_s7  ;;  %142 = vrot.lane.b32.xlu1 %v792_v3, %s744_s8 }
  0x38   :  { %144 = vrot.lane.b32.xlu0 %v799_v4, %s744_s8  ;;  %185 = vrot.lane.b32.xlu1 %v792_v3, %s739_s26 }
  0x3c   :  { %187 = vrot.lane.b32.xlu0 %v799_v4, %s739_s26  ;;  %402 = vrot.lane.b32.xlu1 %v804_v5, %s743_s7 }
  0x40   :  { %404 = vrot.lane.b32.xlu0 %v810_v6, %s743_s7  ;;  %426 = vrot.lane.b32.xlu1 %v804_v5, %s744_s8 }
  0x44   :  { %428 = vrot.lane.b32.xlu0 %v810_v6, %s744_s8  ;;  %450 = vrot.lane.b32.xlu1 %v804_v5, %s739_s26 }
  0x48   :  { %452 = vrot.lane.b32.xlu0 %v810_v6, %s739_s26  ;;  %194 = vrot.lane.b32.xlu1 %v792_v3, %s745_s9 }
  0x4c   :  { %196 = vrot.lane.b32.xlu0 %v799_v4, %s745_s9  ;;  %458 = vrot.lane.b32.xlu1 %v804_v5, %s745_s9 }
  0x50   :  { %460 = vrot.lane.b32.xlu0 %v810_v6, %s745_s9  ;;  %264 = vperm.xlu1 %720, %v93_v8  }
  0x76   :  { %v23_v9 = vpop.permute.xlu0 %22  ;;  %v27_v10 = vpop.permute.xlu1 %26 }
  0x77   :  { %v37_v19 = vsel %vm36_vm0, %v778_v1, %v23_v9  ;;  %vm247_vm0 = vcmask 1041408  }
  0x7a   :  { %v25_v11 = vpop.permute.xlu0 %24  ;;  %v29_v12 = vpop.permute.xlu1 %28 }
  0x7b   :  { %v39_v20 = vsel %vm38_vm1, %v37_v19, %v25_v11 }
  0x7c   :  { %v41_v23 = vsel %vm40_vm2, %v39_v20, %v27_v10  ;;  %vm129_vm2 = vcmp.lt.s32.totalorder %v778_v1, 15 }
  0x7d   :  { %v43_v26 = vsel %vm42_vm3, %v41_v23, %v29_v12  ;;  %vm172_vm3 = vcmp.lt.s32.totalorder %v778_v1, 113 }
  0x7e   :  { %v31_v13 = vpop.permute.xlu0 %30  ;;  %v33_v14 = vpop.permute.xlu1 %32 }
  0x7f   :  { %v45_v29 = vsel %vm44_vm4, %v43_v26, %v31_v13  ;;  %vm103_vm4 = vcmp.lt.s32.totalorder %v778_v1, 17 }
  0x80   :  { %v47_v30 = vsel %vm46_vm5, %v45_v29, %v33_v14  ;;  %vm146_vm5 = vcmp.lt.s32.totalorder %v778_v1, 1 }
  0x82   :  { %v35_v15 = vpop.permute.xlu0 %34  ;;  %v156_v16 = vpop.permute.xlu1 %155 }
  0x83   :  { %v49_v33 = vsel %vm48_vm6, %v47_v30, %v35_v15  ;;  %vm189_vm6 = vcmp.lt.s32.totalorder %v778_v1, 112 }
  0x84   :  { %vm55_vm7 = vcmp.le.s32.totalorder %v49_v33, 14  ;;  %vm54_vm9 = vcmp.ge.s32.totalorder %v49_v33, 1 }
  0x85   :  { %v680_v39 = vsel %vm55_vm7, 1.0, %v734_v2  ;;  %vm880_vm11 = vmand %vm50_vm8, %vm54_vm9  ;;  %v677_v49 = vsel %vm54_vm9, 1.0, %v734_v2 }
  0x86   :  { %v158_v17 = vpop.permute.xlu0 %157  ;;  %v852_v18 = vpop.permute.xlu1 %434  ;;  %vm66_vm13 = vmand %vm50_vm8, %vm55_vm7  ;;  %v893_v43 = vrot.slane %v680_v39, %v875_v38  ;;  %v676_v52 = vsel %vm880_vm11, 1.0, %v734_v2  ;;  %v930_v57 = vrot.slane %v677_v49, %v875_v38  ;;  %vm253_vm8 = vcmask 1045504  }
  0x87   :  { %vm77_vm14 = vmand %vm53_vm10, %vm54_vm9  ;;  %v160_v44 = vsel %vm159_vm12, %v156_v16, %v158_v17  ;;  %v161_v45 = vsel %vm159_vm12, %v158_v17, %v156_v16  ;;  %v679_v50 = vsel %vm66_vm13, 1.0, %v734_v2  ;;  %v939_v60 = vrot.slane %v676_v52, %v875_v38 }
  0x88   :  { %v684_v51 = vsel %vm77_vm14, 1.0, %v734_v2  ;;  %vm914_vm1 = vmand %vm53_vm10, %vm55_vm7  ;;  %v166_v54 = vmul.f32 %v160_v44, %v893_v43  ;;  %v167_v55 = vmul.f32 %v161_v45, %v893_v43  ;;  %v933_v58 = vrot.slane %v679_v50, %v875_v38 }
  0x89   :  { %v936_v59 = vrot.slane %v684_v51, %v875_v38  ;;  %vm250_vm7 = vcmask 1043456   ;;  %v952_v8 = vsel %vm914_vm1, 1.0, %v734_v2  ;;  %vm198_vm9 = vcmp.lt.s32.totalorder %v778_v1, 111 }
  0x8a   :  { %v855_v21 = vpop.permute.xlu0 %436  ;;  %v857_v22 = vpop.permute.xlu1 %116  ;;  %v231_v9 = vrot.slane %v166_v54, 6  ;;  %v232_v10 = vrot.slane %v167_v55, 6  ;;  %vm267_vm10 = vcmask 146432   ;;  %vm640_vm11 = vcmask 1040384  }
  0x8b   :  { %v438_v13 = vsel %vm159_vm12, %v852_v18, %v855_v21  ;;  %v439_v2 = vsel %vm159_vm12, %v855_v21, %v852_v18  ;;  %vm665_vm12 = vcmask 0  }
  0x8c   :  { %v986_v26 = vmul.f32 %v438_v13, %v893_v43  ;;  %v257_v33 = vsel %vm247_vm0, %v799_v4, %v232_v10  ;;  %v256_v35 = vsel %vm247_vm0, %v792_v3, %v231_v9 }
  0x8e   :  { %v859_v24 = vpop.permute.xlu0 %118  ;;  %v861_v25 = vpop.permute.xlu1 %125 }
  0x8f   :  { %v122_v63 = vsel %vm120_vm15, %v859_v24, %v857_v22  ;;  %v121_v14 = vsel %vm120_vm15, %v857_v22, %v859_v24 }
  0x90   :  { %v123_v16 = vmul.f32 %v900_v46, %v122_v63  ;;  %v214_v40 = vrot.slane %v121_v14, 6 }
  0x92   :  { %v128_v27 = vpop.permute.xlu0 %127  ;;  %v169_v28 = vpop.permute.xlu1 %168  ;;  %v213_v39 = vrot.slane %v123_v16, 6 }
  0x93   :  { %v130_v11 = vsel %vm129_vm2, %v861_v25, %v128_v27  ;;  %v131_v12 = vsel %vm129_vm2, %v128_v27, %v861_v25  ;;  %v989_v27 = vmul.f32 %v439_v2, %v893_v43 }
  0x94   :  { %v140_v21 = vmul.f32 %v933_v58, %v131_v12  ;;  %v141_v25 = vmul.f32 %v893_v43, %v130_v11 }
  0x96   :  { %v171_v31 = vpop.permute.xlu0 %170  ;;  %v863_v32 = vpop.permute.xlu1 %410  ;;  %v219_v50 = vrot.slane %v140_v21, 4  ;;  %v220_v51 = vrot.slane %v141_v25, 4 }
  0x97   :  { %v173_v0 = vsel %vm172_vm3, %v169_v28, %v171_v31  ;;  %v174_v7 = vsel %vm172_vm3, %v171_v31, %v169_v28 }
  0x98   :  { %v183_v17 = vmul.f32 %v173_v0, %v930_v57  ;;  %v184_v19 = vmul.f32 %v936_v59, %v174_v7 }
  0x9a   :  { %v869_v36 = vpop.permute.xlu0 %412  ;;  %v871_v37 = vpop.permute.xlu1 %418  ;;  %v237_v44 = vrot.slane %v183_v17, 4  ;;  %v238_v45 = vrot.slane %v184_v19, 4 }
  0x9c   :  { %v259_v12 = vsel %vm250_vm7, %v257_v33, %v238_v45  ;;  %v258_v13 = vsel %vm250_vm7, %v256_v35, %v237_v44  ;;  %v487_v33 = vrot.slane %v989_v27, 6 }
  0x9e   :  { %v885_v41 = vpop.permute.xlu0 %420  ;;  %v887_v42 = vpop.permute.xlu1 %442 }
  0x9f   :  { %v422_v7 = vsel %vm129_vm2, %v871_v37, %v885_v41 }
  0xa2   :  { %v903_v47 = vpop.permute.xlu0 %444  ;;  %v100_v48 = vpop.permute.xlu1 %99 }
  0xa6   :  { %v102_v61 = vpop.permute.xlu0 %101  ;;  %v143_v62 = vpop.permute.xlu1 %142 }
  0xa7   :  { %v104_v15 = vsel %vm103_vm4, %v100_v48, %v102_v61  ;;  %v105_v20 = vsel %vm103_vm4, %v102_v61, %v100_v48  ;;  %v414_v61 = vsel %vm120_vm15, %v863_v32, %v869_v36 }
  0xa8   :  { %v115_v28 = vmul.f32 %v930_v57, %v104_v15  ;;  %v114_v30 = vmul.f32 %v939_v60, %v105_v20  ;;  %v469_v35 = vrot.slane %v414_v61, 6 }
  0xaa   :  { %v145_v23 = vpop.permute.xlu0 %144  ;;  %v186_v18 = vpop.permute.xlu1 %185  ;;  %v249_v3 = vsel %vm247_vm0, %v115_v28, %v214_v40  ;;  %v248_v0 = vsel %vm247_vm0, %v114_v30, %v213_v39 }
  0xab   :  { %v147_v22 = vsel %vm146_vm5, %v143_v62, %v145_v23  ;;  %v148_v24 = vsel %vm146_vm5, %v145_v23, %v143_v62  ;;  %v415_v62 = vsel %vm120_vm15, %v869_v36, %v863_v32  ;;  %v446_v32 = vsel %vm172_vm3, %v887_v42, %v903_v47 }
  0xac   :  { %v154_v29 = vmul.f32 %v147_v22, %v930_v57  ;;  %v153_v31 = vmul.f32 %v148_v24, %v930_v57  ;;  %v447_v36 = vsel %vm172_vm3, %v903_v47, %v887_v42  ;;  %v252_v2 = vsel %vm250_vm7, %v249_v3, %v220_v51 }
  0xad   :  { %v251_v19 = vsel %vm250_vm7, %v248_v0, %v219_v50  ;;  %v416_v20 = vmul.f32 %v900_v46, %v415_v62  ;;  %v423_v47 = vsel %vm129_vm2, %v885_v41, %v871_v37  ;;  %v448_v21 = vmul.f32 %v446_v32, %v930_v57 }
  0xae   :  { %v188_v48 = vpop.permute.xlu0 %187  ;;  %v403_v49 = vpop.permute.xlu1 %402  ;;  %v226_v54 = vrot.slane %v154_v29, 2  ;;  %v225_v63 = vrot.slane %v153_v31, 2  ;;  %v449_v25 = vmul.f32 %v447_v36, %v936_v59  ;;  %v425_v46 = vmul.f32 %v422_v7, %v893_v43 }
  0xaf   :  { %v190_v52 = vsel %vm189_vm6, %v186_v18, %v188_v48  ;;  %v191_v53 = vsel %vm189_vm6, %v188_v48, %v186_v18  ;;  %v486_v37 = vrot.slane %v986_v26, 6  ;;  %v424_v39 = vmul.f32 %v423_v47, %v933_v58 }
  0xb0   :  { %v193_v4 = vmul.f32 %v926_v56, %v191_v53  ;;  %v243_v55 = vrot.slane %v190_v52, 2  ;;  %v255_v16 = vsel %vm253_vm8, %v252_v2, %v226_v54  ;;  %v254_v42 = vsel %vm253_vm8, %v251_v19, %v225_v63  ;;  %v92_v2 = vld [vmem:[%s1130_s1] sm:$0xf] }
  0xb1   :  { %v468_v44 = vrot.slane %v416_v20, 6  ;;  %v492_v45 = vrot.slane %v448_v21, 4  ;;  %v493_v48 = vrot.slane %v449_v25, 4  ;;  %v475_v26 = vrot.slane %v425_v46, 4 }
  0xb2   :  { %v244_v9 = vrot.slane %v193_v4, 2  ;;  %v405_v10 = vpop.permute.xlu0 %404  ;;  %v427_v11 = vpop.permute.xlu1 %426  ;;  %v260_v14 = vsel %vm253_vm8, %v258_v13, %v243_v55  ;;  %v474_v4 = vrot.slane %v424_v39, 4  ;;  %v508_v3 = vsel %vm247_vm0, %v804_v5, %v486_v37 }
  0xb3   :  { %v406_v15 = vsel %vm103_vm4, %v403_v49, %v405_v10  ;;  %v407_v23 = vsel %vm103_vm4, %v405_v10, %v403_v49  ;;  %v699_v24 = vpack.c.bf16 %v260_v14, %v254_v42  ;;  %v510_v7 = vsel %vm250_vm7, %v508_v3, %v492_v45 }
  0xb4   :  { %v261_v17 = vsel %vm253_vm8, %v259_v12, %v244_v9  ;;  %v409_v29 = vmul.f32 %v406_v15, %v930_v57  ;;  %v408_v41 = vmul.f32 %v407_v23, %v939_v60  ;;  %v208_v60 = vrot.slane %v952_v8, %v875_v38 }
  0xb5   :  { %v697_v18 = vpack.c.bf16 %v261_v17, %v255_v16  ;;  %v509_v8 = vsel %vm247_vm0, %v810_v6, %v487_v33 }
  0xb6   :  { %v429_v22 = vpop.permute.xlu0 %428  ;;  %v451_v28 = vpop.permute.xlu1 %450  ;;  %v503_v52 = vsel %vm247_vm0, %v409_v29, %v469_v35  ;;  %v502_v54 = vsel %vm247_vm0, %v408_v41, %v468_v44  ;;  %v511_v0 = vsel %vm250_vm7, %v509_v8, %v493_v48  ;;  %v95_v41 = vld [vmem:[%s1128_s0] sm:$0xcc]  ;;  %v692_v48 = vld [vmem:[%s1128_s0 + $0x8] sm:$0xcc] }
  0xb7   :  { %v430_v30 = vsel %vm146_vm5, %v427_v11, %v429_v22  ;;  %v431_v31 = vsel %vm146_vm5, %v429_v22, %v427_v11  ;;  %698 = vmatprep.subr.bf16.mxu0 %v697_v18  ;;  %v505_v63 = vsel %vm250_vm7, %v503_v52, %v475_v26  ;;  %v504_v10 = vsel %vm250_vm7, %v502_v54, %v474_v4 }
  0xb8   :  { %v433_v59 = vmul.f32 %v430_v30, %v930_v57  ;;  %700 = vmatpush1.bf16.msra.mxu0 %v699_v24  ;;  %v432_v40 = vmul.f32 %v431_v31, %v930_v57 }
  0xba   :  { %v453_v49 = vpop.permute.xlu0 %452  ;;  %v195_v50 = vpop.permute.xlu1 %194  ;;  %v481_v58 = vrot.slane %v433_v59, 2  ;;  %v480_v55 = vrot.slane %v432_v40, 2 }
  0xbb   :  { %v454_v51 = vsel %vm189_vm6, %v451_v28, %v453_v49  ;;  %v455_v27 = vsel %vm189_vm6, %v453_v49, %v451_v28 }
  0xbc   :  { %v457_v57 = vmul.f32 %v926_v56, %v455_v27  ;;  %v498_v53 = vrot.slane %v454_v51, 2  ;;  %v507_v13 = vsel %vm253_vm8, %v505_v63, %v481_v58  ;;  %v506_v14 = vsel %vm253_vm8, %v504_v10, %v480_v55 }
  0xbe   :  { %v499_v61 = vrot.slane %v457_v57, 2  ;;  %v197_v62 = vpop.permute.xlu0 %196  ;;  %v512_v6 = vsel %vm253_vm8, %v510_v7, %v498_v53  ;;  %v459_v12 = vpop.permute.xlu1 %458 }
  0xbf   :  { %v199_v56 = vsel %vm198_vm9, %v195_v50, %v197_v62  ;;  %v200_v9 = vsel %vm198_vm9, %v197_v62, %v195_v50  ;;  %v703_v16 = vpack.c.bf16 %v512_v6, %v506_v14 }
  0xc0   :  { %v209_v5 = vmul.f32 %v199_v56, %v893_v43  ;;  %v210_v11 = vmul.f32 %v208_v60, %v200_v9  ;;  %v513_v32 = vsel %vm253_vm8, %v511_v0, %v499_v61 }
  0xc1   :  { %v701_v36 = vpack.c.bf16 %v513_v32, %v507_v13 }
  0xc2   :  { %688 = vmatprep.subr.msk.mxu0 %vm247_vm0, %v210_v11  ;;  %v461_v15 = vpop.permute.xlu0 %460 }
  0xc3   :  { %v462_v17 = vsel %vm198_vm9, %v459_v12, %v461_v15  ;;  %v463_v19 = vsel %vm198_vm9, %v461_v15, %v459_v12  ;;  %689 = vmatpush1.msk.msra.mxu0 %vm247_vm0, %v209_v5  ;;  %702 = vmatprep.subr.bf16.mxu1 %v701_v36 }
  0xc4   :  { %v465_v20 = vmul.f32 %v463_v19, %v208_v60  ;;  %690 = vmatmul.mubr.msk.f32.vlgmr.msra.gmra.mrb[0].mxu0 %vm267_vm10, %v92_v2  ;;  %704 = vmatpush1.bf16.msra.mxu1 %v703_v16  ;;  %v464_v23 = vmul.f32 %v462_v17, %v893_v43 }
  0xc6   :  { %693 = vmatprep.subr.msk.mxu1 %vm247_vm0, %v465_v20 }
  0xc8   :  { %694 = vmatpush1.msk.msra.mxu1 %vm247_vm0, %v464_v23 }
  0xc9   :  { %695 = vmatmul.mubr.msk.f32.vlgmr.msra.gmra.mrb[0].mxu1 %vm267_vm10, %v92_v2 }
  0xcf   :  { %v265_v18 = vpop.permute.xlu1 %264 }
 0x197   :  { %v343_v42 = vpop.f32.mrb[0].mxu0 }
 0x198   :  { %v344_v47 = vadd.f32 %v343_v42, %v265_v18  ;;  %v345_v21 = vpop.f32.mrb[1].mxu0 }
 0x199   :  { %v346_v25 = vadd.f32 %v345_v21, %v265_v18 }
 0x19a   :  { %v360_v1 = vmul.f32 -2.0, %v344_v47  ;;  %v356_v58 = vsub.f32 0.0, %v344_v47 }
 0x19b   :  { %v350_v22 = vcombine.low %v344_v47, %v346_v25  ;;  %v361_v24 = vmul.f32 -2.0, %v346_v25  ;;  %v357_v4 = vsub.f32 0.0, %v346_v25 }
 0x19c   :  { %v362_v28 = vmul.f32 1.442695, %v360_v1  ;;  %v586_v46 = vpop.f32.mrb[0].mxu1 }
 0x19d   :  { %352 = vst [vmem:[%s1131_s4] sm:$0xff] %v350_v22  ;;  %v364_v43 = vmul.f32 1.442695, %v361_v24  ;;  %v587_v29 = vadd.f32 %v586_v46, %v265_v18  ;;  %v588_v30 = vpop.f32.mrb[1].mxu1  ;;  %v353_v31 = vrot.slane %v350_v22, 6 }
 0x19e   :  { %724 = vpow2.f32 %v362_v28  ;;  %v589_v37 = vadd.f32 %v588_v30, %v265_v18 }
 0x19f   :  { %726 = vpow2.f32 %v364_v43  ;;  %v604_v59 = vmul.f32 -2.0, %v587_v29  ;;  %v355_v40 = vsub.f32 %v95_v41, %v353_v31  ;;  %v600_v0 = vsub.f32 0.0, %v587_v29 }
 0x1a0   :  { %v593_v33 = vcombine.low %v587_v29, %v589_v37  ;;  %v605_v35 = vmul.f32 -2.0, %v589_v37  ;;  %v601_v10 = vsub.f32 0.0, %v589_v37 }
 0x1a1   :  { %v606_v39 = vmul.f32 1.442695, %v604_v59  ;;  %v358_v49 = vmul.f32 %v355_v40, %v355_v40 }
 0x1a2   :  { %696 = vst [vmem:[%s1131_s4 + $0x8] sm:$0xff] %v593_v33  ;;  %v608_v44 = vmul.f32 1.442695, %v605_v35  ;;  %v597_v45 = vrot.slane %v593_v33, 6 }
 0x1a3   :  { %728 = vpow2.f32 %v606_v39  ;;  %v359_v51 = vmul.f32 0.5, %v358_v49  ;;  %v644_v49 = vld [vmem:[%s1132_s3 + $0x1] sm:$0x1] }
 0x1a4   :  { %730 = vpow2.f32 %v608_v44  ;;  %v599_v50 = vsub.f32 %v692_v48, %v597_v45  ;;  %v657_v45 = vsub.s32 1, %v866_v34  ;;  %v643_v48 = vld [vmem:[%s1132_s3] sm:$0x1] }
 0x1a6   :  { %v602_v52 = vmul.f32 %v599_v50, %v599_v50 }
 0x1a8   :  { %v725_v60 = vpop.eup %724  ;;  %v603_v3 = vmul.f32 0.5, %v602_v52 }
 0x1a9   :  { %v727_v26 = vpop.eup %726 }
 0x1aa   :  { %v368_v27 = vcombine.low %v725_v60, %v727_v26 }
 0x1ac   :  { %v370_v57 = vmul.f32 %v368_v27, %v359_v51 }
 0x1ad   :  { %v729_v53 = vpop.eup %728 }
 0x1ae   :  { %v731_v54 = vpop.eup %730  ;;  %v372_v55 = vcombine.high %v370_v57, %v370_v57  ;;  %v374_v8 = vsub.f32 %v356_v58, %v370_v57 }
 0x1af   :  { %v612_v61 = vcombine.low %v729_v53, %v731_v54 }
 0x1b0   :  { %v375_v62 = vsub.f32 %v357_v4, %v372_v55  ;;  %v378_v63 = vrot.slane %v374_v8, 2 }
 0x1b1   :  { %v614_v7 = vmul.f32 %v612_v61, %v603_v3 }
 0x1b2   :  { %v379_v56 = vrot.slane %v375_v62, 2  ;;  %v382_v9 = vsel %vm247_vm0, %v378_v63, 0.0 }
 0x1b3   :  { %v616_v6 = vcombine.high %v614_v7, %v614_v7  ;;  %v618_v5 = vsub.f32 %v600_v0, %v614_v7  ;;  %v383_v11 = vrot.slane %v382_v9, 4 }
 0x1b4   :  { %v389_v12 = vsel %vm247_vm0, %v379_v56, 0.0 }
 0x1b5   :  { %v390_v13 = vrot.slane %v389_v12, 4  ;;  %v619_v32 = vsub.f32 %v601_v10, %v616_v6  ;;  %v622_v36 = vrot.slane %v618_v5, 2  ;;  %v384_v2 = vadd.f32 %v383_v11, %v382_v9 }
 0x1b7   :  { %v391_v14 = vadd.f32 %v390_v13, %v389_v12  ;;  %v623_v15 = vrot.slane %v619_v32, 2  ;;  %v385_v16 = vrot.slane %v384_v2, 2  ;;  %v626_v17 = vsel %vm247_vm0, %v622_v36, 0.0 }
 0x1b8   :  { %v627_v19 = vrot.slane %v626_v17, 4 }
 0x1b9   :  { %v633_v20 = vsel %vm247_vm0, %v623_v15, 0.0  ;;  %v392_v23 = vrot.slane %v391_v14, 2  ;;  %v386_v42 = vadd.f32 %v385_v16, %v384_v2 }
 0x1ba   :  { %v634_v18 = vrot.slane %v633_v20, 4  ;;  %v628_v47 = vadd.f32 %v627_v19, %v626_v17 }
 0x1bb   :  { %v393_v25 = vadd.f32 %v392_v23, %v391_v14  ;;  %v387_v22 = vrot.slane %v386_v42, 1 }
 0x1bc   :  { %v635_v21 = vadd.f32 %v634_v18, %v633_v20  ;;  %v629_v1 = vrot.slane %v628_v47, 2 }
 0x1bd   :  { %v394_v46 = vrot.slane %v393_v25, 1  ;;  %v388_v30 = vadd.f32 %v387_v22, %v386_v42 }
 0x1be   :  { %v630_v24 = vadd.f32 %v629_v1, %v628_v47  ;;  %v636_v28 = vrot.slane %v635_v21, 2 }
 0x1bf   :  { %v395_v41 = vadd.f32 %v394_v46, %v393_v25 }
 0x1c0   :  { %v631_v43 = vrot.slane %v630_v24, 1  ;;  %v637_v29 = vadd.f32 %v636_v28, %v635_v21 }
 0x1c2   :  { %v632_v31 = vadd.f32 %v631_v43, %v630_v24  ;;  %v638_v37 = vrot.slane %v637_v29, 1 }
 0x1c4   :  { %v639_v59 = vadd.f32 %v638_v37, %v637_v29  ;;  %v641_v33 = vsel %vm640_vm11, %v388_v30, %v632_v31 }
 0x1c5   :  { %v645_v39 = vsel %vm247_vm0, %v641_v33, 0.0 }
 0x1c6   :  { %v642_v35 = vsel %vm640_vm11, %v395_v41, %v639_v59 }
 0x1c7   :  { %v646_v40 = vsel %vm247_vm0, %v642_v35, 0.0 }
 0x1c8   :  { %v647_v44 = vadd.f32 %v646_v40, %v645_v39 }
 0x1ca   :  { %648 = vadd.xlane.f32.xlu0 %v647_v44 }
 0x257   :  { %v649_v50 = vpop.xlane.xlu0 %648 }
 0x258   :  { %v654_v60 = vrot.slane %v649_v50, %v875_v38  ;;  %v658_v26 = vrot.slane %v649_v50, %v657_v45 }
 0x25a   :  { %v661_v51 = vadd.f32 %v654_v60, %v643_v48  ;;  %v662_v27 = vadd.f32 %v658_v26, %v644_v49 }
 0x25c   :  { %v663_v52 = vadd.f32 -470.49652, %v661_v51  ;;  %v664_v58 = vadd.f32 -470.49652, %v662_v27 }
 0x25e   :  { %666 = vst.msk [vmem:[%s1133_s5] sm:$0x1] %vm665_vm12, %v663_v52  ;;  %667 = vst.msk [vmem:[%s1133_s5 + $0x1] sm:$0x1] %vm665_vm12, %v664_v58 }

</bundles_post_ra>
